<compile_context>
chip_gen: v5e
topology: v5e:2x2
jax: 0.10.0
libtpu: 0.0.40
codegen_flags: <defaults>
</compile_context>

<pallas_src>
import functools

import jax
import jax.numpy as jnp
from jax.experimental import pallas as pl
from jax.experimental.pallas import tpu as pltpu

HIDDEN = 16


def _round_up(x, m):
    return ((x + m - 1) // m) * m


def _cv_kernel(x_ref, w1t_ref, b1_ref, w2t_ref, b2_ref, w3t_ref, b3_ref, y_ref):
    # x: (M, TN)  -- rows of the flattened (B*S) batch live on the lane axis.
    x = x_ref[...]

    # Layer 1: (16, M) @ (M, TN) + (16, 1) -> tanh            (lane-dense)
    h1 = jnp.tanh(
        jnp.dot(w1t_ref[...], x, preferred_element_type=jnp.float32) + b1_ref[...])

    # Layer 2: (16, 16) @ (16, TN) + (16, 1) -> tanh
    h2 = jnp.tanh(
        jnp.dot(w2t_ref[...], h1, preferred_element_type=jnp.float32) + b2_ref[...])

    # Layer 3: (1, 16) @ (16, TN) + (1, 1)  -> lane-dense (1, TN) store
    y_ref[...] = (
        jnp.dot(w3t_ref[...], h2, preferred_element_type=jnp.float32) + b3_ref[...])


@functools.partial(jax.jit, static_argnames=("mean", "tile_n"))
def control_variate_forward(aux, params, mean=True, tile_n=2048):
    """aux: (B, S, M) float32.  Returns (B,) if mean else (B, S)."""
    B, S, M = aux.shape
    w1, b1, w2, b2, w3, b3 = params
    N = B * S

    # --- lane-dense layout plumbing (wrapper side) ---------------------------
    x_t = aux.reshape(N, M).T                       # (M, N): rows -> lanes
    tn = min(tile_n, _round_up(N, 128))             # lane tile, multiple of 128
    n_pad = _round_up(N, tn)
    if n_pad != N:
        x_t = jnp.pad(x_t, ((0, 0), (0, n_pad - N)))

    # Weights pre-transposed for (features_out, features_in) @ (features_in, TN);
    # biases as 2-D columns so the add is a single lane-broadcast (no 1-D padding).
    w1t = w1.T                                      # (16, M)
    w2t = w2.T                                      # (16, 16)
    w3t = w3.T                                      # (1, 16)
    b1c = b1.reshape(HIDDEN, 1)
    b2c = b2.reshape(HIDDEN, 1)
    b3c = b3.reshape(1, 1)

    def resident(arr):
        # Tiny operand kept resident in VMEM: same block every grid step.
        return pl.BlockSpec(arr.shape, lambda i: (0, 0))

    grid = (n_pad // tn,)

    y = pl.pallas_call(
        _cv_kernel,
        out_shape=jax.ShapeDtypeStruct((1, n_pad), jnp.float32),
        grid_spec=pltpu.PrefetchScalarGridSpec(
            num_scalar_prefetch=0,
            grid=grid,
            in_specs=[
                pl.BlockSpec((M, tn), lambda i: (0, i)),   # pipelined input tile
                resident(w1t), resident(b1c),
                resident(w2t), resident(b2c),
                resident(w3t), resident(b3c),
            ],
            out_specs=pl.BlockSpec((1, tn), lambda i: (0, i)),
        ),
        compiler_params=pltpu.CompilerParams(
            dimension_semantics=("parallel",),          # megacore shard on v7x
            vmem_limit_bytes=32 * 1024 * 1024,          # explicit; fits v7x 64 MiB
        ),
    )(x_t, w1t, b1c, w2t, b2c, w3t, b3c)

    out = y[0, :N].reshape(B, S)
    if mean:
        # Tiny (B, S) reduce; keeping it in the wrapper avoids a second output
        # DMA stream / unused-output writeback inside the kernel.
        return jnp.mean(out, axis=1)
    return out


def init_params(num_mixtures, key):
    """Deterministic init mimicking torch.nn.Linear (uniform +/- 1/sqrt(fan_in))."""
    def linear(k, fan_in, fan_out):
        kw, kb = jax.random.split(k)
        bound = 1.0 / jnp.sqrt(jnp.float32(fan_in))
        w = jax.random.uniform(kw, (fan_in, fan_out), jnp.float32, -bound, bound)
        b = jax.random.uniform(kb, (fan_out,), jnp.float32, -bound, bound)
        return w, b

    k1, k2, k3 = jax.random.split(key, 3)
    w1, b1 = linear(k1, num_mixtures, HIDDEN)
    w2, b2 = linear(k2, HIDDEN, HIDDEN)
    w3, b3 = linear(k3, HIDDEN, 1)
    return (w1, b1, w2, b2, w3, b3)


def _reference_forward(aux, params, mean=True):
    """Pure-JAX reference of the PyTorch forward for a correctness check."""
    w1, b1, w2, b2, w3, b3 = params
    B, S, M = aux.shape
    x = aux.reshape(-1, M)
    h = jnp.tanh(x @ w1 + b1)
    h = jnp.tanh(h @ w2 + b2)
    y = (h @ w3 + b3)[:, 0].reshape(B, S)
    return jnp.mean(y, axis=1) if mean else y


if __name__ == "__main__":
    key = jax.random.PRNGKey(0)
    k_data, k_params, k_big = jax.random.split(key, 3)

    # Small shape matching the module's forward: [batch, S, num_mixtures].
    batch, S, num_mixtures = 2, 8, 4
    aux = jax.random.normal(k_data, (batch, S, num_mixtures), dtype=jnp.float32)
    params = init_params(num_mixtures, k_params)

    out_mean = control_variate_forward(aux, params, mean=True)
    out_full = control_variate_forward(aux, params, mean=False)
    jax.block_until_ready((out_mean, out_full))

    ref_mean = _reference_forward(aux, params, mean=True)
    ref_full = _reference_forward(aux, params, mean=False)

    assert out_mean.shape == (batch,)
    assert out_full.shape == (batch, S)
    assert jnp.allclose(out_mean, ref_mean, atol=1e-5, rtol=1e-5)
    assert jnp.allclose(out_full, ref_full, atol=1e-5, rtol=1e-5)

    # Multi-tile sanity check (exercises the grid / pipelining path: N=4096 > TILE_N).
    aux_big = jax.random.normal(k_big, (8, 512, num_mixtures), dtype=jnp.float32)
    big_mean = control_variate_forward(aux_big, params, mean=True)
    big_full = control_variate_forward(aux_big, params, mean=False)
    jax.block_until_ready((big_mean, big_full))
    assert jnp.allclose(big_mean, _reference_forward(aux_big, params, True),
                        atol=1e-5, rtol=1e-5)
    assert jnp.allclose(big_full, _reference_forward(aux_big, params, False),
                        atol=1e-5, rtol=1e-5)

    print("KERNEL_OK")
</pallas_src>

<mosaic_0001>
module attributes {stable_mosaic.version = 11 : i64} {
  func.func @_cv_kernel(%arg0: i32, %arg1: memref<4x128xf32, #tpu.memory_space<vmem>>, %arg2: memref<16x4xf32, #tpu.memory_space<vmem>>, %arg3: memref<16x1xf32, #tpu.memory_space<vmem>>, %arg4: memref<16x16xf32, #tpu.memory_space<vmem>>, %arg5: memref<16x1xf32, #tpu.memory_space<vmem>>, %arg6: memref<1x16xf32, #tpu.memory_space<vmem>>, %arg7: memref<1x1xf32, #tpu.memory_space<vmem>>, %arg8: memref<1x128xf32, #tpu.memory_space<vmem>>) attributes {dimension_semantics = [#tpu.dimension_semantics<parallel>], iteration_bounds = array<i64: 1>, scalar_prefetch = 0 : i64, scratch_operands = 0 : i64, tpu.core_type = #tpu.core_type<tc>, window_params = [{transform_indices = @transform_0, window_bounds = array<i64: 4, 128>}, {pipeline_mode = #tpu.pipeline_mode<synchronous>, transform_indices = @transform_1, window_bounds = array<i64: 16, 4>}, {pipeline_mode = #tpu.pipeline_mode<synchronous>, transform_indices = @transform_2, window_bounds = array<i64: 16, 1>}, {pipeline_mode = #tpu.pipeline_mode<synchronous>, transform_indices = @transform_3, window_bounds = array<i64: 16, 16>}, {pipeline_mode = #tpu.pipeline_mode<synchronous>, transform_indices = @transform_4, window_bounds = array<i64: 16, 1>}, {pipeline_mode = #tpu.pipeline_mode<synchronous>, transform_indices = @transform_5, window_bounds = array<i64: 1, 16>}, {pipeline_mode = #tpu.pipeline_mode<synchronous>, transform_indices = @transform_6, window_bounds = array<i64: 1, 1>}, {transform_indices = @transform_7, window_bounds = array<i64: 1, 128>}]} {
    %c0 = arith.constant 0 : index
    %c0_0 = arith.constant 0 : index
    %0 = vector.load %arg1[%c0, %c0_0] : memref<4x128xf32, #tpu.memory_space<vmem>>, vector<4x128xf32>
    %c0_1 = arith.constant 0 : index
    %c0_2 = arith.constant 0 : index
    %1 = vector.load %arg2[%c0_1, %c0_2] : memref<16x4xf32, #tpu.memory_space<vmem>>, vector<16x4xf32>
    %cst = arith.constant dense<0.000000e+00> : vector<16x128xf32>
    %2 = tpu.matmul %1, %0, %cst {dimension_numbers = #tpu.dot_dimension_numbers<[1], [0], [0], [1], [0, 0, 1, 1], [], []>} : vector<16x4xf32>, vector<4x128xf32>, vector<16x128xf32> -> vector<16x128xf32>
    %c0_3 = arith.constant 0 : index
    %c0_4 = arith.constant 0 : index
    %3 = vector.load %arg3[%c0_3, %c0_4] : memref<16x1xf32, #tpu.memory_space<vmem>>, vector<16x1xf32>
    %4 = vector.broadcast %3 : vector<16x1xf32> to vector<16x128xf32>
    %5 = arith.addf %2, %4 : vector<16x128xf32>
    %6 = math.tanh %5 : vector<16x128xf32>
    %c0_5 = arith.constant 0 : index
    %c0_6 = arith.constant 0 : index
    %7 = vector.load %arg4[%c0_5, %c0_6] : memref<16x16xf32, #tpu.memory_space<vmem>>, vector<16x16xf32>
    %cst_7 = arith.constant dense<0.000000e+00> : vector<16x128xf32>
    %8 = tpu.matmul %7, %6, %cst_7 {dimension_numbers = #tpu.dot_dimension_numbers<[1], [0], [0], [1], [0, 0, 1, 1], [], []>} : vector<16x16xf32>, vector<16x128xf32>, vector<16x128xf32> -> vector<16x128xf32>
    %c0_8 = arith.constant 0 : index
    %c0_9 = arith.constant 0 : index
    %9 = vector.load %arg5[%c0_8, %c0_9] : memref<16x1xf32, #tpu.memory_space<vmem>>, vector<16x1xf32>
    %10 = vector.broadcast %9 : vector<16x1xf32> to vector<16x128xf32>
    %11 = arith.addf %8, %10 : vector<16x128xf32>
    %12 = math.tanh %11 : vector<16x128xf32>
    %c0_10 = arith.constant 0 : index
    %c0_11 = arith.constant 0 : index
    %13 = vector.load %arg6[%c0_10, %c0_11] : memref<1x16xf32, #tpu.memory_space<vmem>>, vector<1x16xf32>
    %cst_12 = arith.constant dense<0.000000e+00> : vector<1x128xf32>
    %14 = tpu.matmul %13, %12, %cst_12 {dimension_numbers = #tpu.dot_dimension_numbers<[1], [0], [0], [1], [0, 0, 1, 1], [], []>} : vector<1x16xf32>, vector<16x128xf32>, vector<1x128xf32> -> vector<1x128xf32>
    %c0_13 = arith.constant 0 : index
    %c0_14 = arith.constant 0 : index
    %15 = vector.load %arg7[%c0_13, %c0_14] : memref<1x1xf32, #tpu.memory_space<vmem>>, vector<1x1xf32>
    %16 = vector.broadcast %15 : vector<1x1xf32> to vector<1x128xf32>
    %17 = arith.addf %14, %16 : vector<1x128xf32>
    %c0_15 = arith.constant 0 : index
    %c0_16 = arith.constant 0 : index
    %18 = vector.load %arg8[%c0_15, %c0_16] : memref<1x128xf32, #tpu.memory_space<vmem>>, vector<1x128xf32>
    tpu.vector_store %arg8[%c0_15, %c0_16], %17 {strides = array<i32>} : memref<1x128xf32, #tpu.memory_space<vmem>>, vector<1x128xf32>,
    return
  }
  func.func @transform_0(%arg0: i32) -> (i32, i32) {
    %c0_i32 = arith.constant 0 : i32
    %c0_i32_0 = arith.constant 0 : i32
    return %c0_i32, %arg0 : i32, i32
  }
  func.func @transform_1(%arg0: i32) -> (i32, i32) {
    %c0_i32 = arith.constant 0 : i32
    %c0_i32_0 = arith.constant 0 : i32
    %c0_i32_1 = arith.constant 0 : i32
    return %c0_i32, %c0_i32_0 : i32, i32
  }
  func.func @transform_2(%arg0: i32) -> (i32, i32) {
    %c0_i32 = arith.constant 0 : i32
    %c0_i32_0 = arith.constant 0 : i32
    %c0_i32_1 = arith.constant 0 : i32
    return %c0_i32, %c0_i32_0 : i32, i32
  }
  func.func @transform_3(%arg0: i32) -> (i32, i32) {
    %c0_i32 = arith.constant 0 : i32
    %c0_i32_0 = arith.constant 0 : i32
    %c0_i32_1 = arith.constant 0 : i32
    return %c0_i32, %c0_i32_0 : i32, i32
  }
  func.func @transform_4(%arg0: i32) -> (i32, i32) {
    %c0_i32 = arith.constant 0 : i32
    %c0_i32_0 = arith.constant 0 : i32
    %c0_i32_1 = arith.constant 0 : i32
    return %c0_i32, %c0_i32_0 : i32, i32
  }
  func.func @transform_5(%arg0: i32) -> (i32, i32) {
    %c0_i32 = arith.constant 0 : i32
    %c0_i32_0 = arith.constant 0 : i32
    %c0_i32_1 = arith.constant 0 : i32
    return %c0_i32, %c0_i32_0 : i32, i32
  }
  func.func @transform_6(%arg0: i32) -> (i32, i32) {
    %c0_i32 = arith.constant 0 : i32
    %c0_i32_0 = arith.constant 0 : i32
    %c0_i32_1 = arith.constant 0 : i32
    return %c0_i32, %c0_i32_0 : i32, i32
  }
  func.func @transform_7(%arg0: i32) -> (i32, i32) {
    %c0_i32 = arith.constant 0 : i32
    %c0_i32_0 = arith.constant 0 : i32
    return %c0_i32, %arg0 : i32, i32
  }
}

</mosaic_0001>

<bundles_post_ra>
// kernel: squeeze.1
= control target key start
LH: loop header
LB: loop body
LE: loop exit
PB: predicated region body
PF: predicated region fallthrough
CT: control target
= control target key end

     0   :  { %vm7_vm0 = vcmask 64512   ;;  %s39_s0 = inlined_call_operand.vmem [shape: f32[16], index: 0, kind: input, shape index: {}]   ;;  %s40_s1 = inlined_call_operand.vmem [shape: f32[2,8], index: 1, kind: output, shape index: {}]  }
   0x1   :  { %v4_v0 = vld [vmem:[%s39_s0] sm:$0x1]  ;;  %s22_s0 = smov 120  }
   0x2   :  { %5 = vst [vmem:[#allocation1] sm:$0x1] %v4_v0 }
   0x9   :  { %v9_v1 = vld [vmem:[#allocation1] sm:$0x1]  }
   0xa   :  { %v6_v2 = vld [vmem:[#allocation1] sm:$0x1]   ;;  %10 = vrot.lane.b32.xlu0 %v9_v1, %s22_s0 }
   0xb   :  { %8 = vst.msk [vmem:[#allocation0] sm:$0x1] %vm7_vm0, %v6_v2  }
  0x7c   :  { %v11_v3 = vpop.permute.xlu0 %10  }
  0x7d   :  { %14 = vst.msk [vmem:[#allocation0 + $0x1] sm:$0x1] %vm7_vm0, %v11_v3  }
  0x84   :  { %v17_v4 = vld [vmem:[#allocation0] sm:$0x3] }
  0x85   :  { %20 = vst [vmem:[%s40_s1] sm:$0x3] %v17_v4 }

// kernel: control_variate_forward.1
= control target key start
LH: loop header
LB: loop body
LE: loop exit
PB: predicated region body
PF: predicated region fallthrough
CT: control target
= control target key end

     0   :  { %vm50_vm0 = vcmask 1043456   ;;  %vm43_vm1 = vcmask 31744   ;;  %v181_v2 = vmov 0   ;;  %vm93_vm2 = vcmask 130048   ;;  %s261_s0 = inlined_call_operand.vmem [shape: f32[4,128], index: 0, kind: input, shape index: {}]   ;;  %s262_s1 = inlined_call_operand.vmem [shape: f32[16,4], index: 1, kind: input, shape index: {}]   ;;  %s263_s2 = inlined_call_operand.vmem [shape: f32[16,1], index: 2, kind: input, shape index: {}]   ;;  %s264_s4 = inlined_call_operand.vmem [shape: f32[16,1], index: 4, kind: input, shape index: {}]   ;;  %s265_s3 = inlined_call_operand.vmem [shape: f32[16,16], index: 3, kind: input, shape index: {}]   ;;  %s266_s6 = inlined_call_operand.<no memory space> [shape: f32[1,1], index: 6, kind: input, shape index: {}]   ;;  %s267_s5 = inlined_call_operand.vmem [shape: f32[1,16], index: 5, kind: input, shape index: {}]   ;;  %s268_s7 = inlined_call_operand.vmem [shape: f32[1,128], index: 7, kind: output, shape index: {}]  }
   0x1   :  { %v28_v0 = vld [vmem:[%s261_s0] sm:$0xf]  ;;  %170 = vset.pattern.permute.xlu0 %v181_v2  ;;  %v32_v3 = vld [vmem:[%s263_s2 + $0x8] sm:$0xff]  ;;  %171 = vset.pattern.permute.xlu1 %v181_v2  ;;  %v12_v18 = vstv %s266_s6 }
   0x2   :  { %v29_v1 = vld [vmem:[%s262_s1] sm:$0xff]  ;;  %161 = vmatpush.msk.msra.mxu0 %vm50_vm0, %v28_v0  ;;  %40 = vperm.xlu0 %170, %v32_v3   ;;  %v30_v5 = vld [vmem:[%s262_s1 + $0x8] sm:$0xff]  ;;  %13 = vst [vmem:[#allocation2] sm:$0x1] %v12_v18 }
   0x3   :  { %162 = vmatmul.msk.f32.vlgmr.msra.gmra.mxu0 %vm43_vm1, %v29_v1  ;;  %172 = vset.pattern.permute.xlu2 %v181_v2  ;;  %v31_v4 = vld [vmem:[%s263_s2] sm:$0xff]  ;;  %v82_v6 = vld [vmem:[%s264_s4 + $0x8] sm:$0xff] }
   0x4   :  { %90 = vperm.xlu1 %171, %v82_v6   ;;  %v81_v7 = vld [vmem:[%s264_s4] sm:$0xff]  ;;  %v80_v16 = vld [vmem:[%s265_s3 + $0x8] sm:$0xff] }
   0x5   :  { %v79_v15 = vld [vmem:[%s265_s3] sm:$0xff] }
   0x6   :  { %v125_v27 = vld [vmem:[%s267_s5] sm:$0x1] }
   0x9   :  { %v126_v20 = vld [vmem:[#allocation2] sm:$0x1] }
   0xa   :  { %35 = vperm.xlu0 %170, %v31_v4   ;;  %129 = vperm.xlu2 %172, %v126_v20  }
   0xb   :  { %163 = vmatmul.msk.f32.gmra.mxu0 %vm43_vm1, %v30_v5 }
   0xc   :  { %85 = vperm.xlu1 %171, %v81_v7  }
  0x64   :  { %v130_v29 = vpop.permute.xlu2 %129 }
  0x65   :  { %v132_v30 = vperm.slane %v130_v29, 0 }
  0x74   :  { %v41_v8 = vpop.permute.xlu0 %40 }
  0x76   :  { %v91_v19 = vpop.permute.xlu1 %90 }
  0x7c   :  { %v36_v10 = vpop.permute.xlu0 %35 }
  0x7e   :  { %v86_v21 = vpop.permute.xlu1 %85 }
  0x80   :  { %v71_v9 = vpop.f32.mrf.mxu0 }
  0x81   :  { %v72_v12 = vadd.f32 %v71_v9, %v36_v10 }
  0x88   :  { %v74_v11 = vpop.f32.mrf.mxu0 }
  0x89   :  { %v75_v13 = vadd.f32 %v74_v11, %v41_v8 }
  0x8b   :  { %173 = vtanh.f32 %v75_v13 }
  0x8c   :  { %175 = vtanh.f32 %v72_v12 }
  0x91   :  { %v174_v14 = vpop.eup %173 }
  0x92   :  { %114 = vmatpush.msra.mxu1 %v174_v14  ;;  %167 = vmatpush.msra.mxu3 %v174_v14  ;;  %v176_v17 = vpop.eup %175 }
  0x94   :  { %115 = vmatpush.msra.mxu1 %v176_v17  ;;  %168 = vmatpush.msra.mxu3 %v176_v17 }
  0x95   :  { %164 = vmatmul.msk.f32.vlgmr.msra.gmra.mxu1 %vm93_vm2, %v79_v15  ;;  %165 = vmatmul.msk.f32.vlgmr.msra.gmra.mxu3 %vm93_vm2, %v80_v16 }
 0x112   :  { %v117_v22 = vpop.f32.mrf.mxu1 }
 0x113   :  { %v118_v24 = vadd.f32 %v117_v22, %v86_v21 }
 0x118   :  { %v120_v23 = vpop.f32.mrf.mxu3 }
 0x119   :  { %v121_v25 = vadd.f32 %v120_v23, %v91_v19 }
 0x11b   :  { %177 = vtanh.f32 %v121_v25 }
 0x11c   :  { %179 = vtanh.f32 %v118_v24 }
 0x121   :  { %v178_v26 = vpop.eup %177 }
 0x122   :  { %150 = vmatpush.msra.mxu2 %v178_v26  ;;  %v180_v28 = vpop.eup %179 }
 0x124   :  { %151 = vmatpush.msra.mxu2 %v180_v28 }
 0x125   :  { %166 = vmatmul.msk.f32.vlgmr.msra.gmra.mxu2 %vm93_vm2, %v125_v27 }
 0x1a8   :  { %v153_v31 = vpop.f32.mrf.mxu2 }
 0x1a9   :  { %v154_v32 = vadd.f32 %v153_v31, %v132_v30 }
 0x1ab   :  { %156 = vst [vmem:[%s268_s7] sm:$0x1] %v154_v32 }

</bundles_post_ra>
